<compile_context>
chip_gen: v5e
topology: v5e:2x2
jax: 0.10.0
libtpu: 0.0.40
codegen_flags: <defaults>
</compile_context>

<pallas_src>
import jax
import jax.numpy as jnp
from jax.experimental import pallas as pl
from jax.experimental.pallas import tpu as pltpu

EPS = 1e-5
LANE = 128
SUBLANE = 8
NEG_INF_BIAS = -1e9  # argmax-safe padding for fake class lanes


def _round_up(n, m):
    return ((n + m - 1) // m) * m


# ----------------------------------------------------------------------------
# Kernel: x(TB, F_in) f32 -> bf16 @ W1(F_in,128) -> relu -> @ W2 -> relu -> @ W3
# BN already folded into W/b.  All lane dims are 128; accumulation in f32.
# Output written in bf16 (padded class lanes carry a -1e9 bias).
# ----------------------------------------------------------------------------
def standardnet_bn_kernel(x_ref, w1_ref, w2_ref, w3_ref, b_ref, out_ref):
    x = x_ref[...].astype(jnp.bfloat16)    # cast in-kernel (VPU has slack)
    b = b_ref[...]                         # (8, 128) f32 (rows 0..2 used)

    h = jnp.dot(x, w1_ref[...], preferred_element_type=jnp.float32)
    h = jnp.maximum(h + b[0:1, :], 0.0)    # f32 epilogue (v5e-safe)

    h = jnp.dot(h.astype(jnp.bfloat16), w2_ref[...],
                preferred_element_type=jnp.float32)
    h = jnp.maximum(h + b[1:2, :], 0.0)

    out = jnp.dot(h.astype(jnp.bfloat16), w3_ref[...],
                  preferred_element_type=jnp.float32)
    out_ref[...] = (out + b[2:3, :]).astype(out_ref.dtype)   # bf16 writeback


# ----------------------------------------------------------------------------
# One-time parameter prep: fold eval-mode BN, pad lane dims to 128, cast bf16.
# NOTE: uses running mean/var -> eval/inference only (not valid for training).
# ----------------------------------------------------------------------------
def fold_and_pack_params(p):
    def fold(w, b, g, beta, m, v):
        scale = g * jax.lax.rsqrt(v + EPS)             # (1, H)
        return w * scale, (b - m) * scale + beta

    w1, b1 = fold(p["w1"], p["b1"], p["g1"], p["beta1"], p["m1"], p["v1"])
    w2, b2 = fold(p["w2"], p["b2"], p["g2"], p["beta2"], p["m2"], p["v2"])
    w3, b3 = p["w3"], p["b3"]

    f_in, h = w1.shape
    n_classes = w3.shape[1]
    hp = _round_up(h, LANE)
    cp = _round_up(n_classes, LANE)
    assert hp == cp, "kernel packs all bias rows at one lane width"

    def pad2(a, rows, cols):
        return jnp.pad(a, ((0, rows - a.shape[0]), (0, cols - a.shape[1])))

    w1p = pad2(w1, f_in, hp).astype(jnp.bfloat16)
    w2p = pad2(w2, hp, hp).astype(jnp.bfloat16)
    w3p = pad2(w3, hp, cp).astype(jnp.bfloat16)

    # Rows 0/1: padded hidden lanes keep zero bias (zero weight cols -> ReLU(0)=0,
    # and the following weight rows are zero, so they contribute nothing).
    # Row 2: padded class lanes get -1e9 so argmax on the padded output is safe.
    bias = jnp.zeros((SUBLANE, hp), jnp.float32)
    bias = bias.at[0, :h].set(b1[0])
    bias = bias.at[1, :h].set(b2[0])
    bias = bias.at[2, :].set(NEG_INF_BIAS)
    bias = bias.at[2, :n_classes].set(b3[0])

    return dict(w1=w1p, w2=w2p, w3=w3p, bias=bias,
                f_in=f_in, hp=hp, cp=cp, n_classes=n_classes)


# ----------------------------------------------------------------------------
# Forward: batch-gridded pallas_call, weights VMEM-resident across steps.
# Returns the PADDED (bp, 128) bf16 logits (argmax-safe); no extra HBM pass.
# ----------------------------------------------------------------------------
def standardnet_bn_forward_padded(x, packed, *, tb=2048):
    """x: [B, input_size] f32. Returns padded logits [bp, 128] bfloat16."""
    B, f_in = x.shape
    hp, cp = packed["hp"], packed["cp"]

    rows = _round_up(B, SUBLANE)
    tb = min(tb, rows)
    # v7x has 2 TensorCores: when the batch permits, cap the tile so the grid
    # has >= 2 steps and the "parallel" axis actually shards across both TCs.
    if rows >= 2 * SUBLANE:
        tb = min(tb, _round_up((rows + 1) // 2, SUBLANE))
    tb = _round_up(tb, SUBLANE)
    bp = _round_up(B, tb)                   # padded batch (multiple of tb)

    if bp != B:
        x = jnp.pad(x, ((0, bp - B), (0, 0)))   # pad only; no dtype pass

    grid = (bp // tb,)
    flops = 2 * bp * (f_in * hp + hp * hp + hp * cp)
    bytes_accessed = (bp * f_in * 4                         # x read (f32)
                      + packed["w1"].size * 2 + packed["w2"].size * 2
                      + packed["w3"].size * 2               # weights (bf16)
                      + packed["bias"].size * 4             # bias (f32)
                      + bp * cp * 2)                        # logits write (bf16)

    out = pl.pallas_call(
        standardnet_bn_kernel,
        out_shape=jax.ShapeDtypeStruct((bp, cp), jnp.bfloat16),
        grid_spec=pltpu.PrefetchScalarGridSpec(
            num_scalar_prefetch=0,
            grid=grid,
            in_specs=[
                pl.BlockSpec((tb, f_in), lambda i: (i, 0)),        # batch tile
                pl.BlockSpec((f_in, hp), lambda i: (0, 0)),        # resident W1
                pl.BlockSpec((hp, hp), lambda i: (0, 0)),          # resident W2
                pl.BlockSpec((hp, cp), lambda i: (0, 0)),          # resident W3
                pl.BlockSpec((SUBLANE, hp), lambda i: (0, 0)),     # packed biases
            ],
            out_specs=pl.BlockSpec((tb, cp), lambda i: (i, 0)),
        ),
        compiler_params=pltpu.CompilerParams(
            dimension_semantics=("parallel",)),                    # megacore
        cost_estimate=pl.CostEstimate(
            flops=flops, transcendentals=0, bytes_accessed=bytes_accessed),
    )(x, packed["w1"], packed["w2"], packed["w3"], packed["bias"])

    return out


def standardnet_bn_logits(x, packed, *, tb=2048):
    """Convenience: exact [B, n_classes] logits (slice is consumer-side glue)."""
    out = standardnet_bn_forward_padded(x, packed, tb=tb)
    return out[:x.shape[0], :packed["n_classes"]]


def standardnet_bn_predict(x, packed, *, tb=2048):
    """predict() equivalent: argmax directly on the argmax-safe padded output."""
    out = standardnet_bn_forward_padded(x, packed, tb=tb)
    return jnp.argmax(out[:x.shape[0]], axis=1)


# ----------------------------------------------------------------------------
# Deterministic synthetic parameters matching StandardNetBn's shapes.
# Linear weights stored transposed ([in, out]); BN params are [1, H] rows.
# ----------------------------------------------------------------------------
def init_params(key, input_size, hidden_size=100, n_classes=7):
    ks = jax.random.split(key, 12)

    def lin(kw, kb, fan_in, fan_out):
        bound = 1.0 / jnp.sqrt(fan_in)
        w = jax.random.uniform(kw, (fan_in, fan_out), jnp.float32, -bound, bound)
        b = jax.random.uniform(kb, (1, fan_out), jnp.float32, -bound, bound)
        return w, b

    w1, b1 = lin(ks[0], ks[1], input_size, hidden_size)
    w2, b2 = lin(ks[2], ks[3], hidden_size, hidden_size)
    w3, b3 = lin(ks[4], ks[5], hidden_size, n_classes)

    g1 = 1.0 + 0.1 * jax.random.normal(ks[6], (1, hidden_size), jnp.float32)
    beta1 = 0.1 * jax.random.normal(ks[7], (1, hidden_size), jnp.float32)
    m1 = 0.1 * jax.random.normal(ks[8], (1, hidden_size), jnp.float32)
    v1 = jax.random.uniform(ks[9], (1, hidden_size), jnp.float32, 0.5, 1.5)

    g2 = 1.0 + 0.1 * jax.random.normal(ks[10], (1, hidden_size), jnp.float32)
    beta2 = 0.1 * jax.random.normal(ks[11], (1, hidden_size), jnp.float32)
    m2 = jnp.zeros((1, hidden_size), jnp.float32)
    v2 = jnp.ones((1, hidden_size), jnp.float32)

    return dict(
        w1=w1, b1=b1, g1=g1, beta1=beta1, m1=m1, v1=v1,
        w2=w2, b2=b2, g2=g2, beta2=beta2, m2=m2, v2=v2,
        w3=w3, b3=b3,
    )


def reference_forward(x, p):
    """Pure-JAX f32 reference with the ORIGINAL (unfolded) BN params."""
    h = x @ p["w1"] + p["b1"]
    h = (h - p["m1"]) / jnp.sqrt(p["v1"] + EPS) * p["g1"] + p["beta1"]
    h = jnp.maximum(h, 0.0)
    h = h @ p["w2"] + p["b2"]
    h = (h - p["m2"]) / jnp.sqrt(p["v2"] + EPS) * p["g2"] + p["beta2"]
    h = jnp.maximum(h, 0.0)
    return h @ p["w3"] + p["b3"]


if __name__ == "__main__":
    key = jax.random.PRNGKey(0)
    k_x, k_p = jax.random.split(key)

    B, INPUT_SIZE, HIDDEN = 8, 32, 100
    x = jax.random.normal(k_x, (B, INPUT_SIZE), jnp.float32)
    raw_params = init_params(k_p, INPUT_SIZE, HIDDEN)

    packed = fold_and_pack_params(raw_params)            # one-time prep
    padded_logits = standardnet_bn_forward_padded(x, packed)
    padded_logits = jax.block_until_ready(padded_logits)

    # Test glue: compare real (B, 7) logits against the f32 reference.
    logits = padded_logits[:B, :packed["n_classes"]].astype(jnp.float32)
    ref = reference_forward(x, raw_params)
    assert logits.shape == (B, 7)
    # bf16 weights/activations/output with f32 accumulation: relaxed tolerance.
    assert jnp.allclose(logits, ref, atol=1e-1, rtol=5e-2), "mismatch vs reference"

    # predict() equivalent: argmax on the argmax-safe padded output.
    preds = jax.block_until_ready(standardnet_bn_predict(x, packed))
    assert preds.shape == (B,)
    assert bool(jnp.all(preds < packed["n_classes"]))    # -1e9 pad lanes never win

    print("KERNEL_OK")
</pallas_src>

<mosaic_0001>
module attributes {stable_mosaic.version = 11 : i64} {
  func.func @standardnet_bn_kernel(%arg0: i32, %arg1: memref<8x32xf32, #tpu.memory_space<vmem>>, %arg2: memref<32x128xbf16, #tpu.memory_space<vmem>>, %arg3: memref<128x128xbf16, #tpu.memory_space<vmem>>, %arg4: memref<128x128xbf16, #tpu.memory_space<vmem>>, %arg5: memref<8x128xf32, #tpu.memory_space<vmem>>, %arg6: memref<8x128xbf16, #tpu.memory_space<vmem>>) attributes {dimension_semantics = [#tpu.dimension_semantics<parallel>], iteration_bounds = array<i64: 1>, scalar_prefetch = 0 : i64, scratch_operands = 0 : i64, tpu.core_type = #tpu.core_type<tc>, window_params = [{transform_indices = @transform_0, window_bounds = array<i64: 8, 32>}, {pipeline_mode = #tpu.pipeline_mode<synchronous>, transform_indices = @transform_1, window_bounds = array<i64: 32, 128>}, {pipeline_mode = #tpu.pipeline_mode<synchronous>, transform_indices = @transform_2, window_bounds = array<i64: 128, 128>}, {pipeline_mode = #tpu.pipeline_mode<synchronous>, transform_indices = @transform_3, window_bounds = array<i64: 128, 128>}, {pipeline_mode = #tpu.pipeline_mode<synchronous>, transform_indices = @transform_4, window_bounds = array<i64: 8, 128>}, {transform_indices = @transform_5, window_bounds = array<i64: 8, 128>}]} {
    %c0 = arith.constant 0 : index
    %c0_0 = arith.constant 0 : index
    %0 = vector.load %arg1[%c0, %c0_0] : memref<8x32xf32, #tpu.memory_space<vmem>>, vector<8x32xf32>
    %1 = arith.truncf %0 : vector<8x32xf32> to vector<8x32xbf16>
    %c0_1 = arith.constant 0 : index
    %c0_2 = arith.constant 0 : index
    %2 = vector.load %arg5[%c0_1, %c0_2] : memref<8x128xf32, #tpu.memory_space<vmem>>, vector<8x128xf32>
    %c0_3 = arith.constant 0 : index
    %c0_4 = arith.constant 0 : index
    %3 = vector.load %arg2[%c0_3, %c0_4] : memref<32x128xbf16, #tpu.memory_space<vmem>>, vector<32x128xbf16>
    %cst = arith.constant dense<0.000000e+00> : vector<8x128xf32>
    %4 = tpu.matmul %1, %3, %cst {dimension_numbers = #tpu.dot_dimension_numbers<[1], [0], [0], [1], [0, 0, 1, 1], [], []>} : vector<8x32xbf16>, vector<32x128xbf16>, vector<8x128xf32> -> vector<8x128xf32>
    %5 = vector.extract_strided_slice %2 {offsets = [0, 0], sizes = [1, 128], strides = [1, 1]} : vector<8x128xf32> to vector<1x128xf32>
    %6 = vector.broadcast %5 : vector<1x128xf32> to vector<8x128xf32>
    %7 = arith.addf %4, %6 : vector<8x128xf32>
    %cst_5 = arith.constant 0.000000e+00 : f32
    %8 = vector.broadcast %cst_5 : f32 to vector<8x128xf32>
    %9 = arith.maximumf %7, %8 : vector<8x128xf32>
    %10 = arith.truncf %9 : vector<8x128xf32> to vector<8x128xbf16>
    %c0_6 = arith.constant 0 : index
    %c0_7 = arith.constant 0 : index
    %11 = vector.load %arg3[%c0_6, %c0_7] : memref<128x128xbf16, #tpu.memory_space<vmem>>, vector<128x128xbf16>
    %cst_8 = arith.constant dense<0.000000e+00> : vector<8x128xf32>
    %12 = tpu.matmul %10, %11, %cst_8 {dimension_numbers = #tpu.dot_dimension_numbers<[1], [0], [0], [1], [0, 0, 1, 1], [], []>} : vector<8x128xbf16>, vector<128x128xbf16>, vector<8x128xf32> -> vector<8x128xf32>
    %13 = vector.extract_strided_slice %2 {offsets = [1, 0], sizes = [1, 128], strides = [1, 1]} : vector<8x128xf32> to vector<1x128xf32>
    %14 = vector.broadcast %13 : vector<1x128xf32> to vector<8x128xf32>
    %15 = arith.addf %12, %14 : vector<8x128xf32>
    %cst_9 = arith.constant 0.000000e+00 : f32
    %16 = vector.broadcast %cst_9 : f32 to vector<8x128xf32>
    %17 = arith.maximumf %15, %16 : vector<8x128xf32>
    %18 = arith.truncf %17 : vector<8x128xf32> to vector<8x128xbf16>
    %c0_10 = arith.constant 0 : index
    %c0_11 = arith.constant 0 : index
    %19 = vector.load %arg4[%c0_10, %c0_11] : memref<128x128xbf16, #tpu.memory_space<vmem>>, vector<128x128xbf16>
    %cst_12 = arith.constant dense<0.000000e+00> : vector<8x128xf32>
    %20 = tpu.matmul %18, %19, %cst_12 {dimension_numbers = #tpu.dot_dimension_numbers<[1], [0], [0], [1], [0, 0, 1, 1], [], []>} : vector<8x128xbf16>, vector<128x128xbf16>, vector<8x128xf32> -> vector<8x128xf32>
    %21 = vector.extract_strided_slice %2 {offsets = [2, 0], sizes = [1, 128], strides = [1, 1]} : vector<8x128xf32> to vector<1x128xf32>
    %22 = vector.broadcast %21 : vector<1x128xf32> to vector<8x128xf32>
    %23 = arith.addf %20, %22 : vector<8x128xf32>
    %24 = arith.truncf %23 : vector<8x128xf32> to vector<8x128xbf16>
    %c0_13 = arith.constant 0 : index
    %c0_14 = arith.constant 0 : index
    %25 = vector.load %arg6[%c0_13, %c0_14] : memref<8x128xbf16, #tpu.memory_space<vmem>>, vector<8x128xbf16>
    tpu.vector_store %arg6[%c0_13, %c0_14], %24 {strides = array<i32>} : memref<8x128xbf16, #tpu.memory_space<vmem>>, vector<8x128xbf16>,
    return
  }
  func.func @transform_0(%arg0: i32) -> (i32, i32) {
    %c0_i32 = arith.constant 0 : i32
    %c0_i32_0 = arith.constant 0 : i32
    return %arg0, %c0_i32 : i32, i32
  }
  func.func @transform_1(%arg0: i32) -> (i32, i32) {
    %c0_i32 = arith.constant 0 : i32
    %c0_i32_0 = arith.constant 0 : i32
    %c0_i32_1 = arith.constant 0 : i32
    return %c0_i32, %c0_i32_0 : i32, i32
  }
  func.func @transform_2(%arg0: i32) -> (i32, i32) {
    %c0_i32 = arith.constant 0 : i32
    %c0_i32_0 = arith.constant 0 : i32
    %c0_i32_1 = arith.constant 0 : i32
    return %c0_i32, %c0_i32_0 : i32, i32
  }
  func.func @transform_3(%arg0: i32) -> (i32, i32) {
    %c0_i32 = arith.constant 0 : i32
    %c0_i32_0 = arith.constant 0 : i32
    %c0_i32_1 = arith.constant 0 : i32
    return %c0_i32, %c0_i32_0 : i32, i32
  }
  func.func @transform_4(%arg0: i32) -> (i32, i32) {
    %c0_i32 = arith.constant 0 : i32
    %c0_i32_0 = arith.constant 0 : i32
    %c0_i32_1 = arith.constant 0 : i32
    return %c0_i32, %c0_i32_0 : i32, i32
  }
  func.func @transform_5(%arg0: i32) -> (i32, i32) {
    %c0_i32 = arith.constant 0 : i32
    %c0_i32_0 = arith.constant 0 : i32
    return %arg0, %c0_i32 : i32, i32
  }
}

</mosaic_0001>

<bundles_post_ra>
// kernel: tpu_custom_call.1
= control target key start
LH: loop header
LB: loop body
LE: loop exit
PB: predicated region body
PF: predicated region fallthrough
CT: control target
= control target key end

     0   :  { %10 = vsyncpa [#allocation3], 0  ;;  %s621_s0 = inlined_call_operand.hbm [shape: f32[8,32], index: 0, kind: input, shape index: {}]   ;;  %s622_s1 = inlined_call_operand.hbm [shape: bf16[32,128], index: 1, kind: input, shape index: {}]   ;;  %s623_s2 = inlined_call_operand.hbm [shape: bf16[128,128], index: 2, kind: input, shape index: {}]   ;;  %s624_s3 = inlined_call_operand.hbm [shape: bf16[128,128], index: 3, kind: input, shape index: {}]   ;;  %s625_s4 = inlined_call_operand.hbm [shape: f32[8,128], index: 4, kind: input, shape index: {}]   ;;  %s626_s5 = inlined_call_operand.hbm [shape: bf16[8,128], index: 5, kind: output, shape index: {}]  }
   0x1   :  { %11 = vsyncpa [#allocation6], 0 }
   0x2   :  { %12 = vsyncpa [#allocation9], 0  ;;  %s29_s20 = sshll.u32 %s622_s1, 4  ;;  %s30_s20 = int_to_ptr.hbm [resolvable:$true] %s29_s20 }
   0x3   :  { %13 = vsyncpa [#allocation4], 0  ;;  %s565_s21 = smov [#allocation5]   ;;  %s55_s25 = sshll.u32 %s624_s3, 4  ;;  %s56_s25 = int_to_ptr.hbm [resolvable:$true] %s55_s25 }
   0x4   :  { %s31_s22 = sshll.u32 %s565_s21, 4  ;;  %s566_s26 = smov 64   ;;  %s32_s22 = int_to_ptr.vmem [resolvable:$true] %s31_s22 }
   0x5   :  { %s567_s27 = smov 4   ;;  %s568_s28 = smov [#allocation8]  }
   0x6   :  { %37 = dma.hbm_to_vmem [thread:$0]  %s30_s20, 256, %s32_s22, [#allocation6], %s566_s26, %s566_s26, %s567_s27  }
   0x7   :  { %s57_s29 = sshll.u32 %s568_s28, 4  ;;  %s19_s7 = sshll.u32 %s621_s0, 4  ;;  %s58_s29 = int_to_ptr.vmem [resolvable:$true] %s57_s29  ;;  %s20_s7 = int_to_ptr.hbm [resolvable:$true] %s19_s7 }
   0x8   :  { %63 = dma.hbm_to_vmem [thread:$0]  %s56_s25, 1024, %s58_s29, [#allocation9], %s566_s26, %s566_s26, %s567_s27  }
   0x9   :  { %s42_s9 = sshll.u32 %s623_s2, 4  ;;  %s569_s10 = smov [#allocation2]   ;;  %s43_s9 = int_to_ptr.hbm [resolvable:$true] %s42_s9 }
   0xa   :  { %s21_s11 = sshll.u32 %s569_s10, 4  ;;  %s570_s3 = smov [#allocation7]   ;;  %s22_s11 = int_to_ptr.vmem [resolvable:$true] %s21_s11 }
   0xb   :  { %24 = dma.hbm_to_vmem [thread:$0]  %s20_s7, 128, %s22_s11, [#allocation3]  }
   0xc   :  { %s44_s12 = sshll.u32 %s570_s3, 4  ;;  %s69_s15 = sshll.u32 %s625_s4, 4  ;;  %s45_s12 = int_to_ptr.vmem [resolvable:$true] %s44_s12  ;;  %s70_s15 = int_to_ptr.hbm [resolvable:$true] %s69_s15 }
   0xd   :  { %50 = dma.hbm_to_vmem [thread:$0]  %s43_s9, 1024, %s45_s12, [#allocation6], %s566_s26, %s566_s26, %s567_s27  }
   0xe   :  { %s571_s0 = smov [#allocation10]  }
   0xf   :  { %s71_s16 = sshll.u32 %s571_s0, 4  ;;  %s72_s16 = int_to_ptr.vmem [resolvable:$true] %s71_s16 }
  0x10   :  { %74 = dma.hbm_to_vmem [thread:$0]  %s70_s15, 128, %s72_s16, [#allocation9]  }
  0x11   :  { %557 = dma.done.wait [#allocation3], 128  }
  0x12   :  { %558 = vsyncadd [#allocation3], 4294967168 }
  0x13   :  { %559 = dma.done.wait [#allocation6], 1280  }
  0x14   :  { %560 = vsyncadd [#allocation6], 4294966016 }
  0x15   :  { %561 = dma.done.wait [#allocation9], 1152  }
  0x16   :  { %562 = vsyncadd [#allocation9], 4294966144  ;;  %v388_v0 = vld [vmem:[#allocation5 + $0x8] sm:$0xff]  ;;  %v387_v2 = vld [vmem:[#allocation5] sm:$0xff]  ;;  %vm116_vm0 = vcmask 261120   ;;  %s572_s2 = smov [#allocation11]  }
  0x17   :  { %v396_v1 = vld [vmem:[#allocation7 + $0x38] sm:$0xff]  ;;  %126 = vmatpush.bf16.msra.mxu0 %v388_v0  ;;  %v96_v3 = vld [vmem:[#allocation2] sm:$0xff]  ;;  %v395_v4 = vld [vmem:[#allocation7 + $0x30] sm:$0xff]  ;;  %s300_s4 = sshll.u32 %s572_s2, 4  ;;  %s302_s19 = sshll.u32 %s626_s5, 4  ;;  %s301_s4 = int_to_ptr.vmem [resolvable:$true] %s300_s4  ;;  %s303_s19 = int_to_ptr.hbm [resolvable:$true] %s302_s19 }
  0x18   :  { %200 = vmatpush.bf16.msra.mxu1 %v396_v1  ;;  %v97_v5 = vpack.c.bf16 %v96_v3, %v96_v3  ;;  %v394_v6 = vld [vmem:[#allocation7 + $0x28] sm:$0xff]  ;;  %v393_v7 = vld [vmem:[#allocation7 + $0x20] sm:$0xff]  ;;  %v392_v8 = vld [vmem:[#allocation7 + $0x18] sm:$0xff] }
  0x19   :  { %v391_v9 = vld [vmem:[#allocation7 + $0x10] sm:$0xff]  ;;  %v390_v10 = vld [vmem:[#allocation7 + $0x8] sm:$0xff]  ;;  %v389_v11 = vld [vmem:[#allocation7] sm:$0xff] }
  0x1a   :  { %v404_v12 = vld [vmem:[#allocation8 + $0x38] sm:$0xff]  ;;  %v403_v13 = vld [vmem:[#allocation8 + $0x30] sm:$0xff]  ;;  %v402_v14 = vld [vmem:[#allocation8 + $0x28] sm:$0xff] }
  0x1b   :  { %127 = vmatpush.bf16.msra.mxu0 %v387_v2  ;;  %280 = vmatpush.bf16.msra.mxu2 %v404_v12  ;;  %v401_v15 = vld [vmem:[#allocation8 + $0x20] sm:$0xff]  ;;  %v400_v16 = vld [vmem:[#allocation8 + $0x18] sm:$0xff]  ;;  %v399_v18 = vld [vmem:[#allocation8 + $0x10] sm:$0xff] }
  0x1c   :  { %201 = vmatpush.bf16.msra.mxu1 %v395_v4  ;;  %v98_v17 = vld [vmem:[#allocation10] sm:$0xff]  ;;  %v398_v25 = vld [vmem:[#allocation8 + $0x8] sm:$0xff] }
  0x1d   :  { %v103_v19 = vperm.slane %v98_v17, 0  ;;  %v397_v26 = vld [vmem:[#allocation8] sm:$0xff]  ;;  %v151_v27 = vperm.slane %v98_v17, 1  ;;  %v231_v33 = vperm.slane %v98_v17, 2 }
  0x1e   :  { %322 = vmatmul.msk.bf16.vlgmr.msra.gmra.mxu0 %vm116_vm0, %v97_v5 }
  0x1f   :  { %281 = vmatpush.bf16.msra.mxu2 %v403_v13 }
  0x20   :  { %202 = vmatpush.bf16.msra.mxu1 %v394_v6 }
  0x23   :  { %282 = vmatpush.bf16.msra.mxu2 %v402_v14 }
  0x24   :  { %203 = vmatpush.bf16.msra.mxu1 %v393_v7 }
  0x27   :  { %283 = vmatpush.bf16.msra.mxu2 %v401_v15 }
  0x28   :  { %204 = vmatpush.bf16.msra.mxu1 %v392_v8 }
  0x2b   :  { %284 = vmatpush.bf16.msra.mxu2 %v400_v16 }
  0x2c   :  { %205 = vmatpush.bf16.msra.mxu1 %v391_v9 }
  0x2f   :  { %285 = vmatpush.bf16.msra.mxu2 %v399_v18 }
  0x30   :  { %206 = vmatpush.bf16.msra.mxu1 %v390_v10 }
  0x33   :  { %286 = vmatpush.bf16.msra.mxu2 %v398_v25 }
  0x34   :  { %207 = vmatpush.bf16.msra.mxu1 %v389_v11 }
  0x37   :  { %287 = vmatpush.bf16.msra.mxu2 %v397_v26 }
  0x9b   :  { %v129_v20 = vpop.f32.mrf.mxu0 }
  0x9c   :  { %v130_v21 = vadd.f32 %v129_v20, %v103_v19 }
  0x9e   :  { %v133_v22 = vmax.f32 %v130_v21, 0.0 }
  0xa0   :  { %v134_v23 = vpack.c.bf16 %v133_v22, %v133_v22 }
  0xa2   :  { %208 = vmatmul.bf16.vlgmr.msra.gmra.mxu1 %v134_v23 }
  0xa3   :  { %v131_v24 = vpop.f32.mrf.mxu0 }
 0x11f   :  { %v209_v28 = vpop.f32.mrf.mxu1 }
 0x120   :  { %v210_v29 = vadd.f32 %v209_v28, %v151_v27 }
 0x122   :  { %v213_v30 = vmax.f32 %v210_v29, 0.0 }
 0x124   :  { %v214_v31 = vpack.c.bf16 %v213_v30, %v213_v30 }
 0x126   :  { %288 = vmatmul.bf16.vlgmr.msra.gmra.mxu2 %v214_v31 }
 0x127   :  { %v211_v32 = vpop.f32.mrf.mxu1 }
 0x1a9   :  { %v289_v34 = vpop.f32.mrf.mxu2 }
 0x1aa   :  { %v290_v35 = vadd.f32 %v289_v34, %v231_v33 }
 0x1ac   :  { %v293_v36 = vpack.c.bf16 %v290_v35, %v290_v35 }
 0x1ae   :  { %294 = vst [vmem:[#allocation11] sm:$0xf] %v293_v36 }
 0x1af   :  { %305 = dma.vmem_to_hbm [thread:$0]  %s301_s4, 64, %s303_s19, [#allocation4]  }
 0x1b1   :  { %v291_v37 = vpop.f32.mrf.mxu2 }
 0x1b2   :  { %563 = dma.done.wait [#allocation4], 64  }
 0x1b3   :  { %564 = vsyncadd [#allocation4], 4294967232 }
 0x1b4   :  { %310 = vsyncpa [#allocation3], 1 }
 0x1b5   :  { %311 = vsyncpa [#allocation6], 1 }
 0x1b6   :  { %312 = vsyncpa [#allocation9], 1 }
 0x1b7   :  { %313 = vsyncpa [#allocation4], 1 }

</bundles_post_ra>
